<compile_context>
chip_gen: v6e
topology: v6e:2x2x1
jax: 0.10.0
libtpu: 0.0.40
codegen_flags: <defaults>
</compile_context>

<pallas_src>
import functools

import jax
import jax.numpy as jnp
from jax.experimental import pallas as pl
from jax.experimental.pallas import tpu as pltpu


def _mlp_kernel(x_ref, w1_ref, b1_ref, w2_ref, b2_ref, w3_ref, b3_ref, o_ref):
    # Layer 1: (tb, 5) @ (5, 50).  x stays f32 (the K=5 matmul is negligible
    # either way); accumulation, bias-add and tanh are f32.
    h = jnp.tanh(
        jnp.dot(x_ref[...], w1_ref[...], preferred_element_type=jnp.float32)
        + b1_ref[...]
    )
    # Layer 2: (tb, 50) @ (50, 50).  Cast activations to the weight dtype so a
    # bf16 compute_dtype gets a native bf16 MXU pass; accumulation stays f32.
    h = jnp.tanh(
        jnp.dot(h.astype(w2_ref.dtype), w2_ref[...],
                preferred_element_type=jnp.float32)
        + b2_ref[...]
    )
    # Layer 3: (tb, 50) @ (50, out_f).  Store the exact-width tile -- no lane
    # padding, no extra HBM pass; the block last-dim equals the full array dim.
    o_ref[...] = jnp.tanh(
        jnp.dot(h.astype(w3_ref.dtype), w3_ref[...],
                preferred_element_type=jnp.float32)
        + b3_ref[...]
    ).astype(o_ref.dtype)


@functools.partial(jax.jit, static_argnames=("block_b",))
def _forward_impl(x, w1, b1, w2, b2, w3, b3, block_b):
    B, in_f = x.shape
    out_f = w3.shape[1]

    grid = (pl.cdiv(B, block_b),)

    # Weights / biases are tiny (<25 KiB total): keep the whole arrays resident
    # in VMEM for the entire kernel (single fetch, no double-buffered copies).
    vmem_whole = pl.BlockSpec(memory_space=pltpu.MemorySpace.VMEM)

    return pl.pallas_call(
        _mlp_kernel,
        out_shape=jax.ShapeDtypeStruct((B, out_f), jnp.float32),
        grid_spec=pltpu.PrefetchScalarGridSpec(
            num_scalar_prefetch=0,
            grid=grid,
            in_specs=[
                pl.BlockSpec((block_b, in_f), lambda i: (i, 0)),  # x tile
                vmem_whole,  # w1
                vmem_whole,  # b1
                vmem_whole,  # w2
                vmem_whole,  # b2
                vmem_whole,  # w3
                vmem_whole,  # b3
            ],
            out_specs=pl.BlockSpec((block_b, out_f), lambda i: (i, 0)),
        ),
        # "parallel" lets v7x shard the batch-tile loop across its 2 TCs
        # (no-op on v5e/v6e).  At block_b <= 8192 the per-step footprint
        # (~0.7 KB/row incl. double-buffered x/out tiles + f32 activation
        # temps) stays well under v5e's 16 MiB scoped-VMEM default, so no
        # vmem_limit override is needed on any generation.
        compiler_params=pltpu.CompilerParams(
            dimension_semantics=("parallel",)
        ),
    )(x, w1, b1, w2, b2, w3, b3)


def _round_up(n, m):
    return -(-n // m) * m


# Per-row VMEM budget (f32): 2x double-buffered x tile (40 B) + 2x out tile
# (24 B) + two (row, 50) f32 activation temps (~400 B) + layer-3 temp/slack
# -> ~0.7 KB/row.  8192 rows ~ 5.7 MiB: safe on v5e (16 MiB scoped default),
# v6e (32 MiB) and v7x (32 MiB scoped / 64 MiB physical).
_MAX_BLOCK_B = 8192


def _choose_block_b(B, align):
    """Large tiles amortize the ~0.35us/step grid overhead; keep >=2 grid
    steps when B allows so both v7x TensorCores get work."""
    if B <= 2 * align:
        return _round_up(B, align)
    half = _round_up(-(-B // 2), align)  # ceil(B/2), aligned
    return min(_MAX_BLOCK_B, half)


def generator_net_forward(x, params, compute_dtype=jnp.float32, block_b=None):
    """3-layer Tanh MLP forward via a Pallas kernel, tiled over the batch dim.

    compute_dtype only affects the (tiny) weights and the in-kernel activation
    casts for layers 2/3; x is always handed to the kernel in float32 so no
    extra wrapper-side HBM pass is spent on a cast.
    """
    w1, b1, w2, b2, w3, b3 = params
    B = x.shape[0]
    cd = jnp.dtype(compute_dtype)

    # bf16 activations pack 2 rows per sublane: keep tiles 16-row aligned.
    align = 8 if cd.itemsize >= 4 else 16
    if block_b is None:
        block_b = _choose_block_b(B, align)

    return _forward_impl(
        x.astype(jnp.float32),
        w1.astype(cd), b1.astype(jnp.float32),
        w2.astype(cd), b2.astype(jnp.float32),
        w3.astype(cd), b3.astype(jnp.float32),
        block_b,
    )


def init_params(key, output_size):
    """Deterministic synthetic init mimicking nn.Linear.

    PyTorch stores W as (out, in); we store the transpose (in, out) so the
    kernel can do x @ W directly.
    """
    ks = jax.random.split(key, 6)

    def linear(kw, kb, fan_in, fan_out):
        bound = 1.0 / jnp.sqrt(fan_in)
        w = jax.random.uniform(kw, (fan_in, fan_out), jnp.float32, -bound, bound)
        b = jax.random.uniform(kb, (1, fan_out), jnp.float32, -bound, bound)
        return w, b

    w1, b1 = linear(ks[0], ks[1], 5, 50)
    w2, b2 = linear(ks[2], ks[3], 50, 50)
    w3, b3 = linear(ks[4], ks[5], 50, output_size)
    return (w1, b1, w2, b2, w3, b3)


def reference_forward(x, params, compute_dtype=jnp.float32):
    """Pure-JAX reference applying the same casts as the kernel."""
    w1, b1, w2, b2, w3, b3 = params
    cd = jnp.dtype(compute_dtype)
    h = jnp.tanh(
        jnp.dot(x.astype(jnp.float32), w1.astype(cd),
                preferred_element_type=jnp.float32) + b1)
    h = jnp.tanh(
        jnp.dot(h.astype(cd), w2.astype(cd),
                preferred_element_type=jnp.float32) + b2)
    return jnp.tanh(
        jnp.dot(h.astype(cd), w3.astype(cd),
                preferred_element_type=jnp.float32) + b3)


if __name__ == "__main__":
    key = jax.random.PRNGKey(0)
    k_params, k_x = jax.random.split(key)

    output_size = 3
    batch = 32  # small demo batch; auto tiling gives 2 grid steps of 16 rows

    params = init_params(k_params, output_size)
    x = jax.random.normal(k_x, (batch, 5), dtype=jnp.float32)

    # f32 path (exact vs. reference).
    out_f32 = jax.block_until_ready(generator_net_forward(x, params))
    ref_f32 = reference_forward(x, params)
    assert out_f32.shape == (batch, output_size)
    assert jnp.allclose(out_f32, ref_f32, atol=1e-5, rtol=1e-5), "f32 mismatch"

    # bf16-weight path (memory win only; MXU width is not the bottleneck).
    out_bf16 = jax.block_until_ready(
        generator_net_forward(x, params, compute_dtype=jnp.bfloat16))
    ref_bf16 = reference_forward(x, params, compute_dtype=jnp.bfloat16)
    assert out_bf16.shape == (batch, output_size)
    assert jnp.allclose(out_bf16, ref_bf16, atol=2e-2, rtol=2e-2), "bf16 mismatch"

    print("KERNEL_OK")
</pallas_src>

<mosaic_0001>
module attributes {stable_mosaic.version = 11 : i64} {
  func.func @_mlp_kernel(%arg0: i32, %arg1: memref<16x5xf32, #tpu.memory_space<vmem>>, %arg2: memref<5x50xf32, #tpu.memory_space<vmem>>, %arg3: memref<1x50xf32, #tpu.memory_space<vmem>>, %arg4: memref<50x50xf32, #tpu.memory_space<vmem>>, %arg5: memref<1x50xf32, #tpu.memory_space<vmem>>, %arg6: memref<50x3xf32, #tpu.memory_space<vmem>>, %arg7: memref<1x3xf32, #tpu.memory_space<vmem>>, %arg8: memref<16x3xf32, #tpu.memory_space<vmem>>) attributes {dimension_semantics = [#tpu.dimension_semantics<parallel>], iteration_bounds = array<i64: 2>, scalar_prefetch = 0 : i64, scratch_operands = 0 : i64, tpu.core_type = #tpu.core_type<tc>, window_params = [{transform_indices = @transform_0, window_bounds = array<i64: 16, 5>}, {pipeline_mode = #tpu.pipeline_mode<synchronous>, transform_indices = @transform_1, window_bounds = array<i64: 5, 50>}, {pipeline_mode = #tpu.pipeline_mode<synchronous>, transform_indices = @transform_2, window_bounds = array<i64: 1, 50>}, {pipeline_mode = #tpu.pipeline_mode<synchronous>, transform_indices = @transform_3, window_bounds = array<i64: 50, 50>}, {pipeline_mode = #tpu.pipeline_mode<synchronous>, transform_indices = @transform_4, window_bounds = array<i64: 1, 50>}, {pipeline_mode = #tpu.pipeline_mode<synchronous>, transform_indices = @transform_5, window_bounds = array<i64: 50, 3>}, {pipeline_mode = #tpu.pipeline_mode<synchronous>, transform_indices = @transform_6, window_bounds = array<i64: 1, 3>}, {transform_indices = @transform_7, window_bounds = array<i64: 16, 3>}]} {
    %c0 = arith.constant 0 : index
    %c0_0 = arith.constant 0 : index
    %0 = vector.load %arg1[%c0, %c0_0] : memref<16x5xf32, #tpu.memory_space<vmem>>, vector<16x5xf32>
    %c0_1 = arith.constant 0 : index
    %c0_2 = arith.constant 0 : index
    %1 = vector.load %arg2[%c0_1, %c0_2] : memref<5x50xf32, #tpu.memory_space<vmem>>, vector<5x50xf32>
    %cst = arith.constant dense<0.000000e+00> : vector<16x50xf32>
    %2 = tpu.matmul %0, %1, %cst {dimension_numbers = #tpu.dot_dimension_numbers<[1], [0], [0], [1], [0, 0, 1, 1], [], []>} : vector<16x5xf32>, vector<5x50xf32>, vector<16x50xf32> -> vector<16x50xf32>
    %c0_3 = arith.constant 0 : index
    %c0_4 = arith.constant 0 : index
    %3 = vector.load %arg3[%c0_3, %c0_4] : memref<1x50xf32, #tpu.memory_space<vmem>>, vector<1x50xf32>
    %4 = vector.broadcast %3 : vector<1x50xf32> to vector<16x50xf32>
    %5 = arith.addf %2, %4 : vector<16x50xf32>
    %6 = math.tanh %5 : vector<16x50xf32>
    %c0_5 = arith.constant 0 : index
    %c0_6 = arith.constant 0 : index
    %7 = vector.load %arg4[%c0_5, %c0_6] : memref<50x50xf32, #tpu.memory_space<vmem>>, vector<50x50xf32>
    %cst_7 = arith.constant dense<0.000000e+00> : vector<16x50xf32>
    %8 = tpu.matmul %6, %7, %cst_7 {dimension_numbers = #tpu.dot_dimension_numbers<[1], [0], [0], [1], [0, 0, 1, 1], [], []>} : vector<16x50xf32>, vector<50x50xf32>, vector<16x50xf32> -> vector<16x50xf32>
    %c0_8 = arith.constant 0 : index
    %c0_9 = arith.constant 0 : index
    %9 = vector.load %arg5[%c0_8, %c0_9] : memref<1x50xf32, #tpu.memory_space<vmem>>, vector<1x50xf32>
    %10 = vector.broadcast %9 : vector<1x50xf32> to vector<16x50xf32>
    %11 = arith.addf %8, %10 : vector<16x50xf32>
    %12 = math.tanh %11 : vector<16x50xf32>
    %c0_10 = arith.constant 0 : index
    %c0_11 = arith.constant 0 : index
    %13 = vector.load %arg6[%c0_10, %c0_11] : memref<50x3xf32, #tpu.memory_space<vmem>>, vector<50x3xf32>
    %cst_12 = arith.constant dense<0.000000e+00> : vector<16x3xf32>
    %14 = tpu.matmul %12, %13, %cst_12 {dimension_numbers = #tpu.dot_dimension_numbers<[1], [0], [0], [1], [0, 0, 1, 1], [], []>} : vector<16x50xf32>, vector<50x3xf32>, vector<16x3xf32> -> vector<16x3xf32>
    %c0_13 = arith.constant 0 : index
    %c0_14 = arith.constant 0 : index
    %15 = vector.load %arg7[%c0_13, %c0_14] : memref<1x3xf32, #tpu.memory_space<vmem>>, vector<1x3xf32>
    %16 = vector.broadcast %15 : vector<1x3xf32> to vector<16x3xf32>
    %17 = arith.addf %14, %16 : vector<16x3xf32>
    %18 = math.tanh %17 : vector<16x3xf32>
    %c0_15 = arith.constant 0 : index
    %c0_16 = arith.constant 0 : index
    %19 = vector.load %arg8[%c0_15, %c0_16] : memref<16x3xf32, #tpu.memory_space<vmem>>, vector<16x3xf32>
    tpu.vector_store %arg8[%c0_15, %c0_16], %18 {strides = array<i32>} : memref<16x3xf32, #tpu.memory_space<vmem>>, vector<16x3xf32>,
    return
  }
  func.func @transform_0(%arg0: i32) -> (i32, i32) {
    %c0_i32 = arith.constant 0 : i32
    %c0_i32_0 = arith.constant 0 : i32
    return %arg0, %c0_i32 : i32, i32
  }
  func.func @transform_1(%arg0: i32) -> (i32, i32) {
    %c0_i32 = arith.constant 0 : i32
    %c0_i32_0 = arith.constant 0 : i32
    %c0_i32_1 = arith.constant 0 : i32
    return %c0_i32, %c0_i32_0 : i32, i32
  }
  func.func @transform_2(%arg0: i32) -> (i32, i32) {
    %c0_i32 = arith.constant 0 : i32
    %c0_i32_0 = arith.constant 0 : i32
    %c0_i32_1 = arith.constant 0 : i32
    return %c0_i32, %c0_i32_0 : i32, i32
  }
  func.func @transform_3(%arg0: i32) -> (i32, i32) {
    %c0_i32 = arith.constant 0 : i32
    %c0_i32_0 = arith.constant 0 : i32
    %c0_i32_1 = arith.constant 0 : i32
    return %c0_i32, %c0_i32_0 : i32, i32
  }
  func.func @transform_4(%arg0: i32) -> (i32, i32) {
    %c0_i32 = arith.constant 0 : i32
    %c0_i32_0 = arith.constant 0 : i32
    %c0_i32_1 = arith.constant 0 : i32
    return %c0_i32, %c0_i32_0 : i32, i32
  }
  func.func @transform_5(%arg0: i32) -> (i32, i32) {
    %c0_i32 = arith.constant 0 : i32
    %c0_i32_0 = arith.constant 0 : i32
    %c0_i32_1 = arith.constant 0 : i32
    return %c0_i32, %c0_i32_0 : i32, i32
  }
  func.func @transform_6(%arg0: i32) -> (i32, i32) {
    %c0_i32 = arith.constant 0 : i32
    %c0_i32_0 = arith.constant 0 : i32
    %c0_i32_1 = arith.constant 0 : i32
    return %c0_i32, %c0_i32_0 : i32, i32
  }
  func.func @transform_7(%arg0: i32) -> (i32, i32) {
    %c0_i32 = arith.constant 0 : i32
    %c0_i32_0 = arith.constant 0 : i32
    return %arg0, %c0_i32 : i32, i32
  }
}

</mosaic_0001>

<bundles_post_ra>
// kernel: _forward_impl.1
= control target key start
LH: loop header
LB: loop body
LE: loop exit
PB: predicated region body
PF: predicated region fallthrough
CT: control target
= control target key end

     0   :  { %s792_s24 = smov 0   ;;  %s878_s0 = inlined_call_operand.vmem [shape: f32[32,5], index: 0, kind: input, shape index: {}]   ;;  %s879_s1 = inlined_call_operand.vmem [shape: f32[5,50], index: 1, kind: input, shape index: {}]   ;;  %s880_s2 = inlined_call_operand.vmem [shape: f32[1,50], index: 2, kind: input, shape index: {}]   ;;  %s881_s3 = inlined_call_operand.vmem [shape: f32[50,50], index: 3, kind: input, shape index: {}]   ;;  %s882_s4 = inlined_call_operand.vmem [shape: f32[1,50], index: 4, kind: input, shape index: {}]   ;;  %s883_s5 = inlined_call_operand.vmem [shape: f32[50,3], index: 5, kind: input, shape index: {}]   ;;  %s884_s6 = inlined_call_operand.vmem [shape: f32[1,3], index: 6, kind: input, shape index: {}]   ;;  %s885_s7 = inlined_call_operand.vmem [shape: f32[32,3], index: 7, kind: output, shape index: {}]  }
   0x1 LB: > { %s641_s25 = sadd.s32 4294967295, %s750_s24   ;;  %p645_p0 = scmp.ge.s32.totalorder %s750_s24, 1  ;;  %s750_s24 = sphi %s792_s24, %s17_s24  }
   0x2   : > { %p238_p1 = scmp.lt.s32.totalorder %s750_s24, 3 }
   0x4   : > { %p239_p2 = pnand %p645_p0, %p238_p1 }
   0x5   : > { %s646_s28 = sshll.u32 (!%p239_p2), %s641_s25, 1 }
   0x6   : > { %242 = sbr.rel (%p239_p2) target bundleno = 653 (0x28d), region = 48  ;;  %p271_p3 = scmp.lt.s32.totalorder (!%p239_p2), %s646_s28, 3 }
   0xb   : > { %v284_v0 = vld [vmem:[%s879_s1] sm:$0x1f]  ;;  %vm299_vm0 = vcmask 1044480   ;;  %s887_s28 = smov (!%p271_p3, %s646_s28), 3  ;;  %vm292_vm1 = vcmask 39936   ;;  %vm401_vm2 = vcmask 1041408  }
   0xc   : > { %685 = vmatprep.subr.msk.mxu0 %vm299_vm0, %v284_v0  ;;  %s647_s29 = sshll.u32 %s887_s28, 3  ;;  %v386_v3 = vld [vmem:[%s881_s3 + $0x30] sm:$0x3]  ;;  %v385_v4 = vld [vmem:[%s881_s3 + $0x28] sm:$0xff]  ;;  %v384_v5 = vld [vmem:[%s881_s3 + $0x20] sm:$0xff]  ;;  %vm394_vm3 = vcmask 408576  }
   0xd   : > { %686 = vmatpush3.msk.msra.mxu0 %vm299_vm0, %v284_v0  ;;  %s274_s9 = scalar_lea.vmem %s878_s0, %s647_s29  ;;  %690 = vmatprep.subr.msk.mxu1 %vm401_vm2, %v386_v3  ;;  %v383_v6 = vld [vmem:[%s881_s3 + $0x18] sm:$0xff]  ;;  %v382_v7 = vld [vmem:[%s881_s3 + $0x10] sm:$0xff]  ;;  %v381_v8 = vld [vmem:[%s881_s3 + $0x8] sm:$0xff]  ;;  %s280_s27 = scalar_lea.vmem %s885_s7, %s647_s29  ;;  %vm582_vm4 = vcmask 23552  }
   0xe   : > { %v282_v1 = vld [vmem:[%s274_s9] sm:$0xff]  ;;  %v283_v2 = vld [vmem:[%s274_s9 + $0x8] sm:$0xff]  ;;  %691 = vmatpush3.msk.msra.mxu1 %vm401_vm2, %v386_v3  ;;  %v488_v17 = vld [vmem:[%s883_s5 + $0x30] sm:$0x3] }
   0xf   : > { %687 = vmatprep.mubr.msk.f32.mxu0 %vm292_vm1, %v282_v1  ;;  %692 = vmatprep.subr.mxu1 %v385_v4  ;;  %v380_v9 = vld [vmem:[%s881_s3] sm:$0xff]  ;;  %v487_v18 = vld [vmem:[%s883_s5 + $0x28] sm:$0xff]  ;;  %v485_v20 = vld [vmem:[%s883_s5 + $0x18] sm:$0xff] }
  0x10   : > { %688 = vmatmul.mubr.msk.f32.vlgmr.msra.gmra.mxu0 %vm292_vm1, %v283_v2  ;;  %693 = vmatpush3.msra.mxu1 %v385_v4  ;;  %v650_v10 = vld [vmem:[%s880_s2] ss:$0 sm:$0xff]  ;;  %v484_v21 = vld [vmem:[%s883_s5 + $0x10] sm:$0xff]  ;;  %v483_v22 = vld [vmem:[%s883_s5 + $0x8] sm:$0xff] }
  0x11   : > { %694 = vmatprep.subr.mxu1 %v384_v5  ;;  %707 = vmatprep.subr.msk.mxu0 %vm401_vm2, %v488_v17  ;;  %v486_v19 = vld [vmem:[%s883_s5 + $0x20] sm:$0xff] }
  0x12   : > { %695 = vmatpush3.msra.mxu1 %v384_v5  ;;  %708 = vmatpush3.msk.msra.mxu0 %vm401_vm2, %v488_v17  ;;  %v482_v23 = vld [vmem:[%s883_s5] sm:$0xff] }
  0x13   : > { %696 = vmatprep.subr.mxu1 %v383_v6  ;;  %709 = vmatprep.subr.mxu0 %v487_v18  ;;  %v654_v24 = vld [vmem:[%s882_s4] ss:$0 sm:$0xff] }
  0x14   : > { %697 = vmatpush3.msra.mxu1 %v383_v6  ;;  %710 = vmatpush3.msra.mxu0 %v487_v18  ;;  %v658_v31 = vld [vmem:[%s884_s6] ss:$0 sm:$0xff] }
  0x15   : > { %698 = vmatprep.subr.mxu1 %v382_v7  ;;  %711 = vmatprep.subr.mxu0 %v486_v19 }
  0x16   : > { %699 = vmatpush3.msra.mxu1 %v382_v7  ;;  %712 = vmatpush3.msra.mxu0 %v486_v19 }
  0x17   : > { %700 = vmatprep.subr.mxu1 %v381_v8  ;;  %713 = vmatprep.subr.mxu0 %v485_v20 }
  0x18   : > { %701 = vmatpush3.msra.mxu1 %v381_v8  ;;  %714 = vmatpush3.msra.mxu0 %v485_v20 }
  0x19   : > { %702 = vmatprep.subr.mxu1 %v380_v9  ;;  %715 = vmatprep.subr.mxu0 %v484_v21 }
  0x1a   : > { %703 = vmatpush3.msra.mxu1 %v380_v9  ;;  %716 = vmatpush3.msra.mxu0 %v484_v21 }
  0x1b   : > { %717 = vmatprep.subr.mxu0 %v483_v22 }
  0x1c   : > { %718 = vmatpush3.msra.mxu0 %v483_v22 }
  0x1d   : > { %719 = vmatprep.subr.mxu0 %v482_v23 }
  0x1e   : > { %720 = vmatpush3.msra.mxu0 %v482_v23 }
  0xd0   : > { %v689_v11 = vpop.f32.mrf.mxu0 }
  0xd1   : > { %v375_v12 = vadd.f32 %v689_v11, %v650_v10 }
  0xd2   : > { %v369_v13 = vpop.f32.mrf.mxu0 }
  0xd3   : > { %v370_v14 = vadd.f32 %v650_v10, %v369_v13 }
  0xd5   : > { %732 = vtanh.f32 %v370_v14 }
  0xd6   : > { %734 = vtanh.f32 %v375_v12 }
  0xe2   : > { %v733_v15 = vpop.eup %732 }
  0xe3   : > { %v735_v16 = vpop.eup %734  ;;  %704 = vmatprep.mubr.msk.f32.mxu1 %vm394_vm3, %v733_v15 }
  0xe4   : > { %705 = vmatmul.mubr.msk.f32.vlgmr.msra.gmra.mxu1 %vm394_vm3, %v735_v16 }
 0x1a4   : > { %v706_v25 = vpop.f32.mrf.mxu1 }
 0x1a5   : > { %v477_v26 = vadd.f32 %v706_v25, %v654_v24 }
 0x1a6   : > { %v471_v27 = vpop.f32.mrf.mxu1 }
 0x1a7   : > { %v472_v28 = vadd.f32 %v654_v24, %v471_v27 }
 0x1a9   : > { %736 = vtanh.f32 %v472_v28 }
 0x1aa   : > { %738 = vtanh.f32 %v477_v26 }
 0x1b6   : > { %v737_v29 = vpop.eup %736 }
 0x1b7   : > { %v739_v30 = vpop.eup %738  ;;  %721 = vmatprep.mubr.msk.f32.mxu0 %vm394_vm3, %v737_v29 }
 0x1b8   : > { %722 = vmatmul.mubr.msk.f32.vlgmr.msra.gmra.mxu0 %vm394_vm3, %v739_v30 }
 0x278   : > { %v723_v32 = vpop.f32.mrf.mxu0 }
 0x279   : > { %v577_v33 = vadd.f32 %v723_v32, %v658_v31 }
 0x27a   : > { %v571_v34 = vpop.f32.mrf.mxu0 }
 0x27b   : > { %v572_v35 = vadd.f32 %v658_v31, %v571_v34 }
 0x27d   : > { %740 = vtanh.f32 %v572_v35 }
 0x27e   : > { %742 = vtanh.f32 %v577_v33 }
 0x28a   : > { %v741_v36 = vpop.eup %740 }
 0x28b   : > { %v743_v37 = vpop.eup %742  ;;  %583 = vst.msk [vmem:[%s280_s27] sm:$0xff] %vm582_vm4, %v741_v36 }
 0x28c   : > { %584 = vst.msk [vmem:[%s280_s27 + $0x8] sm:$0xff] %vm582_vm4, %v743_v37 }
 0x28d PF: > { %s17_s24 = sadd.s32 1, %s750_s24  }
 0x28e   : > { %p14_p4 = scmp.ge.s32.totalorder %s17_s24, 4  }
 0x290   :  { %16 = sbr.rel (!%p14_p4) target bundleno = 1 (0x1), region = 78 }

</bundles_post_ra>
